<compile_context>
chip_gen: v5e
topology: v5e:2x2
jax: 0.10.0
libtpu: 0.0.40
codegen_flags: <defaults>
</compile_context>

<pallas_src>
import jax
import jax.numpy as jnp
from jax.experimental import pallas as pl
from jax.experimental.pallas import tpu as pltpu


# ---------------------------------------------------------------------------
# Kernels
# ---------------------------------------------------------------------------

def _pool_sum_kernel(x_ref, sum_ref):
    """Accumulate per-channel spatial sums over HW tiles.

    x_ref:   (C, tile) slab of the current batch element, native dtype.
    sum_ref: (C, 1) f32 accumulator, resident across the HW (reduction) axis.
    """
    @pl.when(pl.program_id(1) == 0)
    def _init():
        sum_ref[...] = jnp.zeros_like(sum_ref)

    # Accumulate in f32 regardless of input dtype (v5e has no bf16 VPU path,
    # and f32 accumulation preserves tolerance for bf16 inputs).
    sum_ref[...] += jnp.sum(x_ref[...].astype(jnp.float32), axis=-1, keepdims=True)


def _scale_kernel(x_ref, attn_ref, o_ref):
    """out = x * attn, with the (C, 1) gate broadcast over the spatial lanes."""
    x = x_ref[...]                                   # (C, tile), native dtype
    gate = attn_ref[...].astype(x.dtype)             # (C, 1)  — cast the tiny operand
    o_ref[...] = (x * gate).astype(o_ref.dtype)


# ---------------------------------------------------------------------------
# Tiling / VMEM helpers
# ---------------------------------------------------------------------------

def _choose_hw_tile(hw, channels, itemsize, batch):
    """Pick the HW (lane) tile.

    Must be a multiple of 128 that divides HW (or the full HW extent).  Sized so
    each (C, tile) block stays within a ~2 MiB budget (=> ~8 MiB with the
    double-buffered in+out blocks of the rescale pass), and shrunk — never below
    512 lanes — until the grid has enough steps to hide the DMA pipeline.
    """
    if hw % 128 != 0:
        return hw  # tiling rules: last block dim must be 128-multiple or full extent

    divisors = [d for d in range(128, hw + 1, 128) if hw % d == 0]
    budget = 2 << 20  # bytes per (C, tile) block
    fitting = [d for d in divisors if channels * d * itemsize <= budget]
    tile = max(fitting) if fitting else 128

    # Prefer >= 8 pipeline steps overall, but keep tiles lane-dense (>= 512).
    while batch * (hw // tile) < 8:
        smaller = [d for d in divisors if 512 <= d < tile]
        if not smaller:
            break
        tile = max(smaller)
    return tile


def _vmem_limit_bytes(*block_bytes):
    """Explicit scoped-VMEM budget: double-buffered blocks + generous headroom,
    capped at v7x's 64 MiB physical VMEM so the same limit is safe everywhere."""
    est = sum(2 * b for b in block_bytes)
    return int(min(max(2 * est, 8 << 20), 64 << 20))


# ---------------------------------------------------------------------------
# Forward
# ---------------------------------------------------------------------------

def eca_forward(x, conv_weight):
    """x: (B, C, H, W) in its native dtype; conv_weight: (kernel_size,)."""
    B, C, H, W = x.shape
    HW = H * W
    dtype = x.dtype
    itemsize = jnp.dtype(dtype).itemsize

    x_flat = x.reshape(B, C, HW)                     # keep native dtype
    tile = _choose_hw_tile(HW, C, itemsize, B)
    n_t = HW // tile

    # ---- Pass 1: per-channel spatial sums (f32) -----------------------------
    sums = pl.pallas_call(
        _pool_sum_kernel,
        out_shape=jax.ShapeDtypeStruct((B, C, 1), jnp.float32),
        grid_spec=pltpu.PrefetchScalarGridSpec(
            num_scalar_prefetch=0,
            grid=(B, n_t),
            in_specs=[
                pl.BlockSpec((pl.Squeezed(), C, tile), lambda b, t: (b, 0, t)),
            ],
            out_specs=pl.BlockSpec((pl.Squeezed(), C, 1), lambda b, t: (b, 0, 0)),
        ),
        compiler_params=pltpu.CompilerParams(
            dimension_semantics=("parallel", "arbitrary"),
            vmem_limit_bytes=_vmem_limit_bytes(C * tile * itemsize, C * 4),
        ),
    )(x_flat)

    # ---- Tiny (B, C) channel conv + sigmoid in plain-JAX glue ---------------
    # Equivalent to nn.Conv1d(1, 1, k, padding=(k-1)//2, bias=False) over the
    # channel axis of the pooled vector, followed by sigmoid. B*C elements —
    # negligible next to the two bandwidth-bound Pallas passes.
    k = conv_weight.shape[0]
    pad = (k - 1) // 2
    y = sums[..., 0] * jnp.float32(1.0 / HW)               # (B, C) f32 mean
    yp = jnp.pad(y, ((0, 0), (pad, pad)))                   # zero-pad channels
    w = conv_weight.astype(jnp.float32)
    conv = sum(w[t] * yp[:, t:t + C] for t in range(k))     # (B, C)
    attn = jax.nn.sigmoid(conv)[..., None]                  # (B, C, 1) f32

    # ---- Pass 2: out = x * attn ---------------------------------------------
    out_flat = pl.pallas_call(
        _scale_kernel,
        out_shape=jax.ShapeDtypeStruct((B, C, HW), dtype),
        grid_spec=pltpu.PrefetchScalarGridSpec(
            num_scalar_prefetch=0,
            grid=(B, n_t),
            in_specs=[
                pl.BlockSpec((pl.Squeezed(), C, tile), lambda b, t: (b, 0, t)),
                pl.BlockSpec((pl.Squeezed(), C, 1), lambda b, t: (b, 0, 0)),
            ],
            out_specs=pl.BlockSpec((pl.Squeezed(), C, tile), lambda b, t: (b, 0, t)),
        ),
        compiler_params=pltpu.CompilerParams(
            dimension_semantics=("parallel", "parallel"),
            vmem_limit_bytes=_vmem_limit_bytes(
                C * tile * itemsize, C * 4, C * tile * itemsize),
        ),
    )(x_flat, attn)

    return out_flat.reshape(B, C, H, W)


# ---------------------------------------------------------------------------
# Pure-JAX reference (mirrors the PyTorch forward)
# ---------------------------------------------------------------------------

def eca_reference(x, conv_weight):
    B, C, H, W = x.shape
    k = conv_weight.shape[0]
    pad = (k - 1) // 2
    xf = x.astype(jnp.float32)
    y = jnp.mean(xf, axis=(2, 3))                             # (B, C)
    yp = jnp.pad(y, ((0, 0), (pad, pad)))                     # zero pad channels
    conv = jnp.stack(
        [jnp.sum(yp[:, c:c + k] * conv_weight.astype(jnp.float32), axis=-1)
         for c in range(C)],
        axis=-1)                                              # (B, C)
    attn = jax.nn.sigmoid(conv)[:, :, None, None]
    return (xf * attn).astype(x.dtype)


# ---------------------------------------------------------------------------
# Smoke test
# ---------------------------------------------------------------------------

if __name__ == "__main__":
    key = jax.random.PRNGKey(0)
    kx, kw, kx2 = jax.random.split(key, 3)

    # Primary small test (matches the module's implied shapes).
    B, C, H, W = 2, 4, 16, 16
    kernel_size = 3
    x = jax.random.normal(kx, (B, C, H, W), dtype=jnp.float32)
    conv_weight = (jax.random.uniform(kw, (kernel_size,), dtype=jnp.float32)
                   - 0.5) * (2.0 / jnp.sqrt(float(kernel_size)))

    out = jax.block_until_ready(eca_forward(x, conv_weight))
    ref = eca_reference(x, conv_weight)
    assert out.shape == (B, C, H, W)
    assert jnp.allclose(out, ref, atol=1e-5, rtol=1e-5), (
        float(jnp.max(jnp.abs(out - ref))))

    # Secondary check exercising multi-tile HW accumulation (HW = 2304 -> n_t > 1).
    B2, C2, H2, W2 = 2, 16, 48, 48
    x2 = jax.random.normal(kx2, (B2, C2, H2, W2), dtype=jnp.float32)
    out2 = jax.block_until_ready(eca_forward(x2, conv_weight))
    ref2 = eca_reference(x2, conv_weight)
    assert jnp.allclose(out2, ref2, atol=1e-5, rtol=1e-5), (
        float(jnp.max(jnp.abs(out2 - ref2))))

    print("KERNEL_OK")
</pallas_src>

<mosaic_0001>
module attributes {stable_mosaic.version = 11 : i64} {
  func.func @_pool_sum_kernel(%arg0: i32, %arg1: i32, %arg2: memref<1x4x256xf32, #tpu.memory_space<vmem>>, %arg3: memref<1x4x1xf32, #tpu.memory_space<vmem>>) attributes {dimension_semantics = [#tpu.dimension_semantics<parallel>, #tpu.dimension_semantics<arbitrary>], iteration_bounds = array<i64: 2, 1>, scalar_prefetch = 0 : i64, scratch_operands = 0 : i64, tpu.core_type = #tpu.core_type<tc>, window_params = [{transform_indices = @transform_0, window_bounds = array<i64: 1, 4, 256>}, {transform_indices = @transform_1, window_bounds = array<i64: 1, 4, 1>}]} {
    %c0_i32 = arith.constant 0 : i32
    %0 = arith.cmpi eq, %arg1, %c0_i32 : i32
    %1 = arith.extui %0 : i1 to i32
    %c0_i32_0 = arith.constant 0 : i32
    %2 = arith.cmpi ne, %1, %c0_i32_0 : i32
    scf.if %2 {
      %cst_9 = arith.constant 0.000000e+00 : f32
      %13 = vector.broadcast %cst_9 : f32 to vector<4x1xf32>
      %c0_10 = arith.constant 0 : index
      %c0_11 = arith.constant 0 : index
      %c0_12 = arith.constant 0 : index
      %14 = vector.load %arg3[%c0_10, %c0_11, %c0_12] : memref<1x4x1xf32, #tpu.memory_space<vmem>>, vector<1x4x1xf32>
      %15 = vector.shape_cast %14 : vector<1x4x1xf32> to vector<4x1xf32>
      %16 = vector.shape_cast %13 : vector<4x1xf32> to vector<1x4x1xf32>
      tpu.vector_store %arg3[%c0_10, %c0_11, %c0_12], %16 {strides = array<i32>} : memref<1x4x1xf32, #tpu.memory_space<vmem>>, vector<1x4x1xf32>,
    } else {
    }
    %c0 = arith.constant 0 : index
    %c0_1 = arith.constant 0 : index
    %c0_2 = arith.constant 0 : index
    %3 = vector.load %arg3[%c0, %c0_1, %c0_2] : memref<1x4x1xf32, #tpu.memory_space<vmem>>, vector<1x4x1xf32>
    %4 = vector.shape_cast %3 : vector<1x4x1xf32> to vector<4x1xf32>
    %c0_3 = arith.constant 0 : index
    %c0_4 = arith.constant 0 : index
    %c0_5 = arith.constant 0 : index
    %5 = vector.load %arg2[%c0_3, %c0_4, %c0_5] : memref<1x4x256xf32, #tpu.memory_space<vmem>>, vector<1x4x256xf32>
    %6 = vector.shape_cast %5 : vector<1x4x256xf32> to vector<4x256xf32>
    %cst = arith.constant dense<0.000000e+00> : vector<4xf32>
    %7 = vector.multi_reduction <add>, %6, %cst [1] : vector<4x256xf32> to vector<4xf32>
    %8 = vector.shape_cast %7 : vector<4xf32> to vector<4x1xf32>
    %9 = arith.addf %4, %8 : vector<4x1xf32>
    %c0_6 = arith.constant 0 : index
    %c0_7 = arith.constant 0 : index
    %c0_8 = arith.constant 0 : index
    %10 = vector.load %arg3[%c0_6, %c0_7, %c0_8] : memref<1x4x1xf32, #tpu.memory_space<vmem>>, vector<1x4x1xf32>
    %11 = vector.shape_cast %10 : vector<1x4x1xf32> to vector<4x1xf32>
    %12 = vector.shape_cast %9 : vector<4x1xf32> to vector<1x4x1xf32>
    tpu.vector_store %arg3[%c0_6, %c0_7, %c0_8], %12 {strides = array<i32>} : memref<1x4x1xf32, #tpu.memory_space<vmem>>, vector<1x4x1xf32>,
    return
  }
  func.func @transform_0(%arg0: i32, %arg1: i32) -> (i32, i32, i32) {
    %c0_i32 = arith.constant 0 : i32
    %c0_i32_0 = arith.constant 0 : i32
    return %arg0, %c0_i32, %arg1 : i32, i32, i32
  }
  func.func @transform_1(%arg0: i32, %arg1: i32) -> (i32, i32, i32) {
    %c0_i32 = arith.constant 0 : i32
    %c0_i32_0 = arith.constant 0 : i32
    %c0_i32_1 = arith.constant 0 : i32
    return %arg0, %c0_i32, %c0_i32_0 : i32, i32, i32
  }
}

</mosaic_0001>

<bundles_post_ra>
// kernel: tpu_custom_call.1
= control target key start
LH: loop header
LB: loop body
LE: loop exit
PB: predicated region body
PF: predicated region fallthrough
CT: control target
= control target key end

     0   :  { %6 = vsyncpa [#allocation3], 0  ;;  %s503_s0 = inlined_call_operand.hbm [shape: f32[2,4,256], index: 0, kind: input, shape index: {}]   ;;  %s504_s1 = inlined_call_operand.vmem [shape: f32[2,4,1], index: 1, kind: output, shape index: {}]  }
   0x1   :  { %8 = vsyncpa [#allocation3 + $0x1], 0  ;;  %s413_s6 = smov 0   ;;  %s415_s7 = smov 0  }
   0x2   :  { %s417_s8 = smov 0   ;;  %s419_s9 = smov 0  }
   0x3   :  { %s421_s10 = smov 0   ;;  %s423_s11 = smov 0  }
   0x4 LB: > { %s251_s12 = sadd.s32 4294967295, %s400_s11   ;;  %s26_s13 = sadd.s32 1, %s396_s10  ;;  %s400_s11 = sphi %s423_s11, %s14_s11   ;;  %s396_s10 = sphi %s421_s10, %s511_s10   ;;  %s392_s9 = sphi %s419_s9, %s510_s9   ;;  %s388_s8 = sphi %s417_s8, %s509_s8   ;;  %s384_s7 = sphi %s415_s7, %s508_s7   ;;  %s380_s6 = sphi %s413_s6, %s507_s6  }
   0x5   : > { %p28_p0 = scmp.ge.s32.totalorder %s26_s13, 2  ;;  %s35_s14 = sadd.s32 1, %s388_s8 }
   0x6   : > { %p42_p1 = scmp.ne.s32.totalorder %s388_s8, %s384_s7  ;;  %p43_p2 = scmp.eq.s32.totalorder %s400_s11, 0 }
   0x7   : > { %s513_s13 = smov (%p28_p0, %s26_s13), 0  ;;  %p48_p4 = scmp.ne.s32.totalorder %s384_s7, %s380_s6 }
   0x8   : > { %p449_p3 = por %p43_p2, %p42_p1  ;;  %s30_s16 = ssub.s32 %s396_s10, %s513_s13 }
   0x9   : > { %p49_p5 = scmp.eq.s32.totalorder %s251_s12, 0  ;;  %p33_p6 = scmp.eq.s32.totalorder %s30_s16, 0 }
   0xa   : > { %p270_p8 = scmp.lt.s32.totalorder %s400_s11, 2  ;;  %s98_s19 = sand.u32 1, %s388_s8  }
   0xb   : > { %p456_p7 = por %p49_p5, %p48_p4  ;;  %s263_s20 = sshll.u32 %s396_s10, 3 }
   0xc   : > { %s462_s18 = scalar_select %p33_p6, %s388_s8, %s35_s14  }
   0xd   : > { %s255_s21 = sshll.u32 %s98_s19, 3  ;;  %s109_s24 = scalar_lea.hbm %s503_s0, %s263_s20 }
   0xe   : > { %s111_s25 = sshll.u32 %s109_s24, 4  ;;  %s102_s26 = scalar_lea.vmem [#allocation2], %s255_s21  ;;  %s112_s25 = int_to_ptr.hbm [resolvable:$true] %s111_s25 }
   0xf   : > { %s113_s27 = sshll.u32 %s102_s26, 4  ;;  %p267_p9 = pnand %p270_p8, %p449_p3  ;;  %s114_s27 = int_to_ptr.vmem [resolvable:$true] %s113_s27 }
  0x10   : > { %p258_p10 = scmp.ge.s32.totalorder %s400_s11, 1  ;;  %p118_p11 = scmp.lt.s32.totalorder %s400_s11, 3 }
  0x11   : > { %s99_s28 = scalar_lea.sflag [#allocation3], %s98_s19 }
  0x12   : > { %269 = dma.hbm_to_vmem [thread:$0]  (!%p267_p9), %s112_s25, 128, %s114_s27, %s99_s28  }
  0x13   : > { %p119_p12 = pnand %p258_p10, %p118_p11 }
  0x14   : > { %s124_s29 = sand.u32 (!%p119_p12), 1, %s384_s7  }
  0x15   : > { %122 = sbr.rel (%p119_p12) target bundleno = 158 (0x9e), region = 24  ;;  %s259_s30 = sshll.u32 (!%p119_p12), %s124_s29, 3 }
  0x16   : > { %s125_s2 = scalar_lea.sflag (!%p119_p12), [#allocation3], %s124_s29  ;;  %s128_s3 = scalar_lea.vmem (!%p119_p12), [#allocation2], %s259_s30 }
  0x1a   : > { %375 = dma.done.wait (%p456_p7), %s125_s2, 128  }
  0x1b   : > { %377 = vsyncadd (%p456_p7), %s125_s2, 4294967168  ;;  %p148_p13 = scmp.lt.s32.totalorder %s392_s9, 1  ;;  %vm156_vm0 = vcmask 3072   ;;  %v402_v0 = vmov 0.0   ;;  %v159_v1 = vld [vmem:[%s128_s3] sm:$0xff]  ;;  %vm166_vm1 = vcmask 1043456  }
  0x1c   : > { %161 = vst [vmem:[#allocation1] ss:$2 sm:$0xff] %v159_v1 }
  0x1d   : > { %s515_s9 = smov (!%p148_p13, %s392_s9), 1 }
  0x1e   : > { %s260_s4 = sshll.u32 %s515_s9, 2 }
  0x1f   : > { %s151_s12 = scalar_lea.vmem %s504_s1, %s260_s4 }
  0x20   : > { %157 = vst.msk [vmem:[%s151_s12] sm:$0xf] %vm156_vm0, %v402_v0 }
  0x23   : > { %v162_v2 = vld.sshfl [vmem:[#allocation1] sm:$0xff pattern:$0x75316420]  ;;  %v163_v3 = vld.sshfl [vmem:[#allocation1 + $0x8] sm:$0xff pattern:$0x75316420] }
  0x24   : > { %v167_v4 = vsel %vm166_vm1, %v162_v2, 0.0  ;;  %v168_v5 = vsel %vm166_vm1, %v163_v3, 0.0 }
  0x25   : > { %v169_v6 = vadd.f32 %v168_v5, %v167_v4 }
  0x27   : > { %170 = vadd.xlane.f32.xlu0 %v169_v6  ;;  %v158_v7 = vld [vmem:[%s151_s12] sm:$0xf] }
  0x9a   : > { %v171_v8 = vpop.xlane.xlu0 %170 }
  0x9b   : > { %v172_v9 = vadd.f32 %v171_v8, %v158_v7 }
  0x9d   : > { %174 = vst.msk [vmem:[%s151_s12] sm:$0xf] %vm156_vm0, %v172_v9 }
  0x9e PF: > { %s14_s11 = sadd.s32 1, %s400_s11   ;;  %s507_s6 = smov %s384_s7 }
  0x9f   : > { %p11_p0 = scmp.ge.s32.totalorder %s14_s11, 4   ;;  %s508_s7 = smov %s388_s8 }
  0xa0   : > { %s509_s8 = smov %s462_s18  ;;  %s510_s9 = smov %s396_s10 }
  0xa1   : > { %s511_s10 = smov %s513_s13  ;;  %13 = sbr.rel (!%p11_p0) target bundleno = 4 (0x4), region = 68 }
  0xa6   :  { %194 = vsyncpa [#allocation3], 1 }
  0xa7   :  { %196 = vsyncpa [#allocation3 + $0x1], 1 }

</bundles_post_ra>
